<compile_context>
chip_gen: v6e
topology: v6e:2x2x1
jax: 0.10.0
libtpu: 0.0.40
codegen_flags: <defaults>
</compile_context>

<pallas_src>
import jax
import jax.numpy as jnp
from jax.experimental import pallas as pl
from jax.experimental.pallas import tpu as pltpu

EPS = 1e-6          # LayerNorm eps (added to std, matching the PyTorch module)
P_DROP = 0.1        # dropout rate


def _fused_kernel(xrow_ref, a_ref, b_ref, w_ref, bias_ref, mask_ref, xres_ref,
                  o_ref, xn_ref):
    """Grid = (rows/tm, D/tn).  Per grid step:
         j == 0 : LayerNorm the whole (tm, D) row tile -> bf16 VMEM scratch
         every j: (tm, D) @ (D, tn) MXU matmul + bias + dropout + residual
    """
    j = pl.program_id(1)

    # ---- LayerNorm over the full feature axis, computed once per row tile ----
    # torch semantics: std is UNBIASED (divide by N-1), eps added to std.
    @pl.when(j == 0)
    def _():
        x = xrow_ref[...].astype(jnp.float32)
        d = x.shape[-1]
        mean = jnp.mean(x, axis=-1, keepdims=True)
        var = jnp.sum((x - mean) ** 2, axis=-1, keepdims=True) * (1.0 / (d - 1))
        inv = 1.0 / (jnp.sqrt(var) + EPS)      # one reciprocal per row, reused as mul
        xn = (a_ref[...].astype(jnp.float32) * (x - mean) * inv
              + b_ref[...].astype(jnp.float32))
        xn_ref[...] = xn.astype(xn_ref.dtype)  # bf16 -> full-rate MXU operand

    # ---- sublayer (Linear): bf16 operands, f32 accumulation on the MXU ----
    y = jnp.dot(xn_ref[...], w_ref[...], preferred_element_type=jnp.float32)
    y = y + bias_ref[...].astype(jnp.float32)

    # ---- inverted dropout (mask holds 0 or 1/(1-p)) + residual add ----
    o_ref[...] = (xres_ref[...].astype(jnp.float32)
                  + y * mask_ref[...]).astype(o_ref.dtype)


def _pick_tile(n, candidates):
    for c in candidates:
        if n % c == 0:
            return c
    return n          # fall back to the full extent (always a legal block dim)


# TODO(synk): on real TPU the dropout mask could be generated in-kernel with
# pltpu.prng_seed / pltpu.prng_random_bits (per-tile seed = seed + program_id),
# removing its HBM read; that path does not lower in CPU/interpret mode.
def make_dropout_mask(key, shape, p=P_DROP, train=True):
    """Inverted-dropout keep/scale mask: 0.0 where dropped, 1/(1-p) where kept."""
    if not train or p == 0.0:
        return jnp.ones(shape, jnp.float32)
    keep = jax.random.bernoulli(key, 1.0 - p, shape)
    return keep.astype(jnp.float32) * (1.0 / (1.0 - p))


def sublayer_connection(x, a2, b2, w, bias, mask2d):
    """x: [B, S, D]; a2/b2: LayerNorm params [D]; w/bias: Linear sublayer params
    [D, D]/[D]; mask2d: [B*S, D] float32 dropout keep/scale mask."""
    B, S, D = x.shape
    R = B * S
    x2d = x.reshape(R, D)

    # Row tile (sublane axis, multiple of 8) and output-feature tile (lane axis,
    # multiple of 128 -> lane-dense unmasked stores, MXU-friendly N).
    tm = _pick_tile(R, (256, 128, 64, 32, 16, 8))
    tn = _pick_tile(D, (512, 256, 128))
    grid = (R // tm, D // tn)

    a2d = a2.reshape(1, D).astype(jnp.float32)
    b2d = b2.reshape(1, D).astype(jnp.float32)
    bias2d = bias.reshape(1, D).astype(jnp.float32)
    w_bf16 = w.astype(jnp.bfloat16)   # halves weight DMA/VMEM, full MXU rate

    out2d = pl.pallas_call(
        _fused_kernel,
        out_shape=jax.ShapeDtypeStruct((R, D), x.dtype),
        grid_spec=pltpu.PrefetchScalarGridSpec(
            num_scalar_prefetch=0,
            grid=grid,
            in_specs=[
                # Full row tile for LayerNorm; block index constant over j, so it
                # is DMA'd once per row tile and stays resident in VMEM.
                pl.BlockSpec((tm, D), lambda i, j: (i, 0)),
                pl.BlockSpec((1, D), lambda i, j: (0, 0)),    # a2
                pl.BlockSpec((1, D), lambda i, j: (0, 0)),    # b2
                pl.BlockSpec((D, tn), lambda i, j: (0, j)),   # weight N-slice (bf16)
                pl.BlockSpec((1, tn), lambda i, j: (0, j)),   # bias N-slice
                pl.BlockSpec((tm, tn), lambda i, j: (i, j)),  # dropout mask tile
                pl.BlockSpec((tm, tn), lambda i, j: (i, j)),  # x tile for residual
            ],
            out_specs=pl.BlockSpec((tm, tn), lambda i, j: (i, j)),
            scratch_shapes=[
                pltpu.VMEM((tm, D), jnp.bfloat16),   # normalized rows (MXU LHS)
            ],
        ),
        compiler_params=pltpu.CompilerParams(
            # Rows are independent -> megacore-shardable on v7x.  The N axis
            # reuses the cached LayerNorm tile, so it stays sequential.
            dimension_semantics=("parallel", "arbitrary"),
        ),
    )(x2d, a2d, b2d, w_bf16, bias2d, mask2d, x2d)
    return out2d.reshape(B, S, D)


if __name__ == "__main__":
    # Small but lane-dense demo shape: feature dim is a multiple of 128.
    B, S, D = 2, 8, 128
    key = jax.random.PRNGKey(0)
    kx, kw, kb, kd = jax.random.split(key, 4)

    x = jax.random.normal(kx, (B, S, D), dtype=jnp.float32)

    # LayerNorm parameters as in the module __init__: ones / zeros.
    a2 = jnp.ones((D,), jnp.float32)
    b2 = jnp.zeros((D,), jnp.float32)

    # Concrete sublayer = Linear(D -> D).
    w = jax.random.normal(kw, (D, D), jnp.float32) * 0.02
    bias = jax.random.normal(kb, (D,), jnp.float32) * 0.02

    # Dropout mask (train mode, p = 0.1), standard JAX PRNG.
    mask2d = make_dropout_mask(kd, (B * S, D), p=P_DROP, train=True)

    out = sublayer_connection(x, a2, b2, w, bias, mask2d)
    out = jax.block_until_ready(out)

    # Pure-JAX reference with identical semantics (same mask, same bf16 matmul).
    x2d = x.reshape(B * S, D)
    mean = jnp.mean(x2d, -1, keepdims=True)
    var = jnp.sum((x2d - mean) ** 2, -1, keepdims=True) / (D - 1)
    inv = 1.0 / (jnp.sqrt(var) + EPS)
    xn = a2 * (x2d - mean) * inv + b2
    y = jnp.dot(xn.astype(jnp.bfloat16), w.astype(jnp.bfloat16),
                preferred_element_type=jnp.float32) + bias
    ref = (x2d + y * mask2d).reshape(B, S, D)

    assert out.shape == (B, S, D)
    assert bool(jnp.all(jnp.isfinite(out)))
    assert bool(jnp.allclose(out, ref, rtol=1e-2, atol=1e-2)), \
        f"max abs err = {float(jnp.max(jnp.abs(out - ref)))}"
    print("KERNEL_OK")
</pallas_src>

<mosaic_0001>
module attributes {stable_mosaic.version = 11 : i64} {
  func.func @_fused_kernel(%arg0: i32, %arg1: i32, %arg2: memref<16x128xf32, #tpu.memory_space<vmem>>, %arg3: memref<1x128xf32, #tpu.memory_space<vmem>>, %arg4: memref<1x128xf32, #tpu.memory_space<vmem>>, %arg5: memref<128x128xbf16, #tpu.memory_space<vmem>>, %arg6: memref<1x128xf32, #tpu.memory_space<vmem>>, %arg7: memref<16x128xf32, #tpu.memory_space<vmem>>, %arg8: memref<16x128xf32, #tpu.memory_space<vmem>>, %arg9: memref<16x128xf32, #tpu.memory_space<vmem>>, %arg10: memref<16x128xbf16, #tpu.memory_space<vmem>>) attributes {dimension_semantics = [#tpu.dimension_semantics<parallel>, #tpu.dimension_semantics<arbitrary>], iteration_bounds = array<i64: 1, 1>, scalar_prefetch = 0 : i64, scratch_operands = 1 : i64, tpu.core_type = #tpu.core_type<tc>, window_params = [{transform_indices = @transform_0, window_bounds = array<i64: 16, 128>}, {pipeline_mode = #tpu.pipeline_mode<synchronous>, transform_indices = @transform_1, window_bounds = array<i64: 1, 128>}, {pipeline_mode = #tpu.pipeline_mode<synchronous>, transform_indices = @transform_2, window_bounds = array<i64: 1, 128>}, {transform_indices = @transform_3, window_bounds = array<i64: 128, 128>}, {transform_indices = @transform_4, window_bounds = array<i64: 1, 128>}, {transform_indices = @transform_5, window_bounds = array<i64: 16, 128>}, {transform_indices = @transform_6, window_bounds = array<i64: 16, 128>}, {transform_indices = @transform_7, window_bounds = array<i64: 16, 128>}]} {
    %c0_i32 = arith.constant 0 : i32
    %0 = arith.cmpi eq, %arg1, %c0_i32 : i32
    %1 = arith.extui %0 : i1 to i32
    %c0_i32_0 = arith.constant 0 : i32
    %2 = arith.cmpi ne, %1, %c0_i32_0 : i32
    scf.if %2 {
      %c0_12 = arith.constant 0 : index
      %c0_13 = arith.constant 0 : index
      %14 = vector.load %arg2[%c0_12, %c0_13] : memref<16x128xf32, #tpu.memory_space<vmem>>, vector<16x128xf32>
      %cst_14 = arith.constant dense<0.000000e+00> : vector<16xf32>
      %15 = vector.multi_reduction <add>, %14, %cst_14 [1] : vector<16x128xf32> to vector<16xf32>
      %16 = vector.shape_cast %15 : vector<16xf32> to vector<16x1xf32>
      %cst_15 = arith.constant 1.280000e+02 : f32
      %17 = vector.broadcast %cst_15 : f32 to vector<16x1xf32>
      %18 = arith.divf %16, %17 : vector<16x1xf32>
      %19 = vector.broadcast %18 : vector<16x1xf32> to vector<16x128xf32>
      %20 = arith.subf %14, %19 : vector<16x128xf32>
      %21 = arith.mulf %20, %20 : vector<16x128xf32>
      %cst_16 = arith.constant dense<0.000000e+00> : vector<16xf32>
      %22 = vector.multi_reduction <add>, %21, %cst_16 [1] : vector<16x128xf32> to vector<16xf32>
      %23 = vector.shape_cast %22 : vector<16xf32> to vector<16x1xf32>
      %cst_17 = arith.constant 0.00787401571 : f32
      %24 = vector.broadcast %cst_17 : f32 to vector<16x1xf32>
      %25 = arith.mulf %23, %24 : vector<16x1xf32>
      %26 = math.sqrt %25 : vector<16x1xf32>
      %cst_18 = arith.constant 9.99999997E-7 : f32
      %27 = vector.broadcast %cst_18 : f32 to vector<16x1xf32>
      %28 = arith.addf %26, %27 : vector<16x1xf32>
      %cst_19 = arith.constant 1.000000e+00 : f32
      %29 = vector.broadcast %cst_19 : f32 to vector<16x1xf32>
      %30 = arith.divf %29, %28 : vector<16x1xf32>
      %c0_20 = arith.constant 0 : index
      %c0_21 = arith.constant 0 : index
      %31 = vector.load %arg3[%c0_20, %c0_21] : memref<1x128xf32, #tpu.memory_space<vmem>>, vector<1x128xf32>
      %32 = vector.broadcast %18 : vector<16x1xf32> to vector<16x128xf32>
      %33 = arith.subf %14, %32 : vector<16x128xf32>
      %34 = vector.broadcast %31 : vector<1x128xf32> to vector<16x128xf32>
      %35 = arith.mulf %34, %33 : vector<16x128xf32>
      %36 = vector.broadcast %30 : vector<16x1xf32> to vector<16x128xf32>
      %37 = arith.mulf %35, %36 : vector<16x128xf32>
      %c0_22 = arith.constant 0 : index
      %c0_23 = arith.constant 0 : index
      %38 = vector.load %arg4[%c0_22, %c0_23] : memref<1x128xf32, #tpu.memory_space<vmem>>, vector<1x128xf32>
      %39 = vector.broadcast %38 : vector<1x128xf32> to vector<16x128xf32>
      %40 = arith.addf %37, %39 : vector<16x128xf32>
      %41 = arith.truncf %40 : vector<16x128xf32> to vector<16x128xbf16>
      %c0_24 = arith.constant 0 : index
      %c0_25 = arith.constant 0 : index
      %42 = vector.load %arg10[%c0_24, %c0_25] : memref<16x128xbf16, #tpu.memory_space<vmem>>, vector<16x128xbf16>
      tpu.vector_store %arg10[%c0_24, %c0_25], %41 {strides = array<i32>} : memref<16x128xbf16, #tpu.memory_space<vmem>>, vector<16x128xbf16>,
    } else {
    }
    %c0 = arith.constant 0 : index
    %c0_1 = arith.constant 0 : index
    %3 = vector.load %arg10[%c0, %c0_1] : memref<16x128xbf16, #tpu.memory_space<vmem>>, vector<16x128xbf16>
    %c0_2 = arith.constant 0 : index
    %c0_3 = arith.constant 0 : index
    %4 = vector.load %arg5[%c0_2, %c0_3] : memref<128x128xbf16, #tpu.memory_space<vmem>>, vector<128x128xbf16>
    %cst = arith.constant dense<0.000000e+00> : vector<16x128xf32>
    %5 = tpu.matmul %3, %4, %cst {dimension_numbers = #tpu.dot_dimension_numbers<[1], [0], [0], [1], [0, 0, 1, 1], [], []>} : vector<16x128xbf16>, vector<128x128xbf16>, vector<16x128xf32> -> vector<16x128xf32>
    %c0_4 = arith.constant 0 : index
    %c0_5 = arith.constant 0 : index
    %6 = vector.load %arg6[%c0_4, %c0_5] : memref<1x128xf32, #tpu.memory_space<vmem>>, vector<1x128xf32>
    %7 = vector.broadcast %6 : vector<1x128xf32> to vector<16x128xf32>
    %8 = arith.addf %5, %7 : vector<16x128xf32>
    %c0_6 = arith.constant 0 : index
    %c0_7 = arith.constant 0 : index
    %9 = vector.load %arg8[%c0_6, %c0_7] : memref<16x128xf32, #tpu.memory_space<vmem>>, vector<16x128xf32>
    %c0_8 = arith.constant 0 : index
    %c0_9 = arith.constant 0 : index
    %10 = vector.load %arg7[%c0_8, %c0_9] : memref<16x128xf32, #tpu.memory_space<vmem>>, vector<16x128xf32>
    %11 = arith.mulf %8, %10 : vector<16x128xf32>
    %12 = arith.addf %9, %11 : vector<16x128xf32>
    %c0_10 = arith.constant 0 : index
    %c0_11 = arith.constant 0 : index
    %13 = vector.load %arg9[%c0_10, %c0_11] : memref<16x128xf32, #tpu.memory_space<vmem>>, vector<16x128xf32>
    tpu.vector_store %arg9[%c0_10, %c0_11], %12 {strides = array<i32>} : memref<16x128xf32, #tpu.memory_space<vmem>>, vector<16x128xf32>,
    return
  }
  func.func @transform_0(%arg0: i32, %arg1: i32) -> (i32, i32) {
    %c0_i32 = arith.constant 0 : i32
    %c0_i32_0 = arith.constant 0 : i32
    return %arg0, %c0_i32 : i32, i32
  }
  func.func @transform_1(%arg0: i32, %arg1: i32) -> (i32, i32) {
    %c0_i32 = arith.constant 0 : i32
    %c0_i32_0 = arith.constant 0 : i32
    %c0_i32_1 = arith.constant 0 : i32
    return %c0_i32, %c0_i32_0 : i32, i32
  }
  func.func @transform_2(%arg0: i32, %arg1: i32) -> (i32, i32) {
    %c0_i32 = arith.constant 0 : i32
    %c0_i32_0 = arith.constant 0 : i32
    %c0_i32_1 = arith.constant 0 : i32
    return %c0_i32, %c0_i32_0 : i32, i32
  }
  func.func @transform_3(%arg0: i32, %arg1: i32) -> (i32, i32) {
    %c0_i32 = arith.constant 0 : i32
    %c0_i32_0 = arith.constant 0 : i32
    return %c0_i32, %arg1 : i32, i32
  }
  func.func @transform_4(%arg0: i32, %arg1: i32) -> (i32, i32) {
    %c0_i32 = arith.constant 0 : i32
    %c0_i32_0 = arith.constant 0 : i32
    return %c0_i32, %arg1 : i32, i32
  }
  func.func @transform_5(%arg0: i32, %arg1: i32) -> (i32, i32) {
    %c0_i32 = arith.constant 0 : i32
    return %arg0, %arg1 : i32, i32
  }
  func.func @transform_6(%arg0: i32, %arg1: i32) -> (i32, i32) {
    %c0_i32 = arith.constant 0 : i32
    return %arg0, %arg1 : i32, i32
  }
  func.func @transform_7(%arg0: i32, %arg1: i32) -> (i32, i32) {
    %c0_i32 = arith.constant 0 : i32
    return %arg0, %arg1 : i32, i32
  }
}

</mosaic_0001>

<bundles_post_ra>
// kernel: tpu_custom_call.1
= control target key start
LH: loop header
LB: loop body
LE: loop exit
PB: predicated region body
PF: predicated region fallthrough
CT: control target
= control target key end

     0   :  { %12 = vsyncpa [#allocation4], 0  ;;  %s578_s0 = inlined_call_operand.hbm [shape: f32[16,128], index: 0, kind: input, shape index: {}]   ;;  %s579_s1 = inlined_call_operand.vmem [shape: f32[1,128], index: 1, kind: input, shape index: {}]   ;;  %s580_s2 = inlined_call_operand.vmem [shape: f32[1,128], index: 2, kind: input, shape index: {}]   ;;  %s581_s3 = inlined_call_operand.hbm [shape: bf16[128,128], index: 3, kind: input, shape index: {}]   ;;  %s582_s4 = inlined_call_operand.vmem [shape: f32[1,128], index: 4, kind: input, shape index: {}]   ;;  %s583_s5 = inlined_call_operand.hbm [shape: f32[16,128], index: 5, kind: input, shape index: {}]   ;;  %s584_s6 = inlined_call_operand.hbm [shape: f32[16,128], index: 6, kind: input, shape index: {}]   ;;  %s585_s7 = inlined_call_operand.hbm [shape: f32[16,128], index: 7, kind: output, shape index: {}]  }
   0x1   :  { %13 = vsyncpa [#allocation7], 0 }
   0x2   :  { %14 = vsyncpa [#allocation10], 0 }
   0x3   :  { %15 = vsyncpa [#allocation5], 0  ;;  %s491_s24 = smov [#allocation6]  }
   0x4   :  { %s37_s25 = sshll.u32 %s491_s24, 4  ;;  %s38_s25 = int_to_ptr.vmem [resolvable:$true] %s37_s25 }
   0x5   :  { %s391_s26 = scalar_lea.vmem %s38_s25, 1024  ;;  %p396_p1 = scmp.lt.s32.totalorder %s38_s25, %s38_s25 }
   0x6   :  { %p392_p0 = scmp.ne.s32.totalorder %s38_s25, %s391_s26  ;;  %p397_p2 = scmp.lt.s32.totalorder %s391_s26, %s391_s26 }
   0x8   :  { %p398_p3 = por %p397_p2, %p396_p1 }
   0xa   :  { %p399_p4 = pnand %p398_p3, %p392_p0 }
   0xc   :  { %402 = shalt.err (!%p399_p4)
}
   0xd   :  { %s492_s27 = smov 64   ;;  %s493_s28 = smov 4  }
   0xe   :  { %43 = dma.hbm_to_vmem [thread:$0]  %s581_s3, 1024, %s38_s25, [#allocation7], %s492_s27, %s492_s27, %s493_s28  }
   0xf   :  { %s494_s8 = smov [#allocation3]  }
  0x10   :  { %s21_s9 = sshll.u32 %s494_s8, 4  ;;  %s22_s9 = int_to_ptr.vmem [resolvable:$true] %s21_s9 }
  0x11   :  { %s411_s10 = scalar_lea.vmem %s22_s9, 256  ;;  %p416_p6 = scmp.lt.s32.totalorder %s22_s9, %s22_s9 }
  0x12   :  { %p412_p5 = scmp.ne.s32.totalorder %s22_s9, %s411_s10  ;;  %p417_p7 = scmp.lt.s32.totalorder %s411_s10, %s411_s10 }
  0x14   :  { %p418_p8 = por %p417_p7, %p416_p6 }
  0x16   :  { %p419_p9 = pnand %p418_p8, %p412_p5 }
  0x18   :  { %422 = shalt.err (!%p419_p9)
}
  0x19   :  { %s495_s11 = smov 128   ;;  %s496_s12 = smov 8  }
  0x1a   :  { %27 = dma.hbm_to_vmem [thread:$0]  %s578_s0, 256, %s22_s9, [#allocation4], %s495_s11, %s495_s11, %s496_s12  }
  0x1b   :  { %s497_s3 = smov [#allocation8]   ;;  %s498_s16 = smov [#allocation9]  }
  0x1c   :  { %s51_s15 = sshll.u32 %s497_s3, 4  ;;  %s63_s17 = sshll.u32 %s498_s16, 4  ;;  %s52_s15 = int_to_ptr.vmem [resolvable:$true] %s51_s15  ;;  %s64_s17 = int_to_ptr.vmem [resolvable:$true] %s63_s17 }
  0x1d   :  { %s431_s18 = scalar_lea.vmem %s52_s15, 256  ;;  %p436_p11 = scmp.lt.s32.totalorder %s52_s15, %s52_s15 }
  0x1e   :  { %p432_p10 = scmp.ne.s32.totalorder %s52_s15, %s431_s18  ;;  %p437_p12 = scmp.lt.s32.totalorder %s431_s18, %s431_s18 }
  0x20   :  { %p438_p13 = por %p437_p12, %p436_p11 }
  0x22   :  { %p439_p0 = pnand %p438_p13, %p432_p10 }
  0x24   :  { %442 = shalt.err (!%p439_p0)
}
  0x25   :  { %57 = dma.hbm_to_vmem [thread:$0]  %s583_s5, 256, %s52_s15, [#allocation7], %s495_s11, %s495_s11, %s496_s12  }
  0x26   :  { %s451_s0 = scalar_lea.vmem %s64_s17, 256  ;;  %p456_p2 = scmp.lt.s32.totalorder %s64_s17, %s64_s17 }
  0x27   :  { %p452_p1 = scmp.ne.s32.totalorder %s64_s17, %s451_s0  ;;  %p457_p3 = scmp.lt.s32.totalorder %s451_s0, %s451_s0 }
  0x29   :  { %p458_p4 = por %p457_p3, %p456_p2 }
  0x2b   :  { %p459_p5 = pnand %p458_p4, %p452_p1 }
  0x2d   :  { %462 = shalt.err (!%p459_p5)
}
  0x2e   :  { %69 = dma.hbm_to_vmem [thread:$0]  %s584_s6, 256, %s64_s17, [#allocation10], %s495_s11, %s495_s11, %s496_s12  }
  0x2f   :  { %483 = dma.done.wait [#allocation4], 256  }
  0x30   :  { %484 = vsyncadd [#allocation4], 4294967040 }
  0x31   :  { %485 = dma.done.wait [#allocation7], 1280  }
  0x32   :  { %486 = vsyncadd [#allocation7], 4294966016 }
  0x33   :  { %487 = dma.done.wait [#allocation10], 256  }
  0x34   :  { %488 = vsyncadd [#allocation10], 4294967040  ;;  %v87_v0 = vld [vmem:[#allocation3] sm:$0xff]  ;;  %v88_v1 = vld [vmem:[#allocation3 + $0x8] sm:$0xff]  ;;  %v499_v11 = vmov 0.0   ;;  %vm500_vm0 = vmmov 0  }
  0x35   :  { %89 = vadd.xlane.f32.xlu0 %v87_v0  ;;  %v366_v10 = vld [vmem:[#allocation6 + $0x38] sm:$0xff]   ;;  %335 = vmatprep.subr.bf16.mxu0 %v499_v11  ;;  %v367_v12 = vld [vmem:[#allocation6 + $0x30] sm:$0xff]   ;;  %v368_v13 = vld [vmem:[#allocation6 + $0x28] sm:$0xff]  }
  0x36   :  { %336 = vmatpush3.bf16.msra.mxu0 %v366_v10  ;;  %v369_v14 = vld [vmem:[#allocation6 + $0x20] sm:$0xff]   ;;  %v370_v15 = vld [vmem:[#allocation6 + $0x18] sm:$0xff]   ;;  %v371_v16 = vld [vmem:[#allocation6 + $0x10] sm:$0xff]   ;;  %351 = vmatprep.mubr.msk.bf16.mxu0 %vm500_vm0, %v499_v11 }
  0x37   :  { %337 = vmatprep.subr.bf16.mxu0 %v499_v11  ;;  %v372_v17 = vld [vmem:[#allocation6 + $0x8] sm:$0xff]   ;;  %v373_v18 = vld [vmem:[#allocation6] sm:$0xff]   ;;  %v276_v51 = vld [vmem:[#allocation9] sm:$0xff] }
  0x38   :  { %v305_v35 = vld [vmem:[%s579_s1] ss:$0 sm:$0xff]  ;;  %v278_v49 = vld [vmem:[#allocation8] sm:$0xff]  ;;  %v277_v58 = vld [vmem:[#allocation9 + $0x8] sm:$0xff]  ;;  %s501_s1 = smov [#allocation11]  }
  0x39   :  { %91 = vadd.xlane.f32.xlu0 %v88_v1  ;;  %v306_v41 = vld [vmem:[%s580_s2] ss:$0 sm:$0xff]  ;;  %s291_s2 = sshll.u32 %s501_s1, 4  ;;  %s292_s2 = int_to_ptr.vmem [resolvable:$true] %s291_s2 }
  0x3a   :  { %338 = vmatpush3.bf16.msra.mxu0 %v367_v12  ;;  %v309_v47 = vld [vmem:[%s582_s4] ss:$0 sm:$0xff]  ;;  %s463_s4 = scalar_lea.vmem %s292_s2, 256  ;;  %p468_p7 = scmp.lt.s32.totalorder %s292_s2, %s292_s2 }
  0x3b   :  { %339 = vmatprep.subr.bf16.mxu0 %v499_v11  ;;  %v279_v55 = vld [vmem:[#allocation8 + $0x8] sm:$0xff]  ;;  %p464_p6 = scmp.ne.s32.totalorder %s292_s2, %s463_s4  ;;  %p469_p8 = scmp.lt.s32.totalorder %s463_s4, %s463_s4 }
  0x3d   :  { %p470_p9 = por %p469_p8, %p468_p7 }
  0x3e   :  { %340 = vmatpush3.bf16.msra.mxu0 %v368_v13 }
  0x3f   :  { %341 = vmatprep.subr.bf16.mxu0 %v499_v11  ;;  %p471_p10 = pnand %p470_p9, %p464_p6 }
  0x42   :  { %342 = vmatpush3.bf16.msra.mxu0 %v369_v14 }
  0x43   :  { %343 = vmatprep.subr.bf16.mxu0 %v499_v11 }
  0x46   :  { %344 = vmatpush3.bf16.msra.mxu0 %v370_v15 }
  0x47   :  { %345 = vmatprep.subr.bf16.mxu0 %v499_v11 }
  0x4a   :  { %346 = vmatpush3.bf16.msra.mxu0 %v371_v16 }
  0x4b   :  { %347 = vmatprep.subr.bf16.mxu0 %v499_v11 }
  0x4e   :  { %348 = vmatpush3.bf16.msra.mxu0 %v372_v17 }
  0x4f   :  { %349 = vmatprep.subr.bf16.mxu0 %v499_v11 }
  0x52   :  { %350 = vmatpush3.bf16.msra.mxu0 %v373_v18 }
  0xbe   :  { %v90_v2 = vpop.xlane.xlu0 %89 }
  0xbf   :  { %v94_v3 = vmul.f32 0.0078125, %v90_v2 }
  0xc1   :  { %v96_v4 = vsub.f32 %v87_v0, %v94_v3 }
  0xc2   :  { %v92_v5 = vpop.xlane.xlu0 %91 }
  0xc3   :  { %v95_v6 = vmul.f32 0.0078125, %v92_v5  ;;  %v98_v7 = vmul.f32 %v96_v4, %v96_v4  ;;  %v133_v37 = vmul.f32 %v305_v35, %v96_v4 }
  0xc5   :  { %v97_v8 = vsub.f32 %v88_v1, %v95_v6  ;;  %100 = vadd.xlane.f32.xlu1 %v98_v7 }
  0xc7   :  { %v99_v9 = vmul.f32 %v97_v8, %v97_v8  ;;  %v134_v38 = vmul.f32 %v305_v35, %v97_v8 }
  0xc9   :  { %102 = vadd.xlane.f32.xlu1 %v99_v9 }
 0x14e   :  { %v101_v19 = vpop.xlane.xlu1 %100 }
 0x14f   :  { %v104_v20 = vmul.f32 0.007874016, %v101_v19 }
 0x151   :  { %375 = vrsqrt.f32 %v104_v20  ;;  %vm108_vm1 = vcmp.eq.f32.partialorder %v104_v20, inf  ;;  %v111_v25 = vand.u32 2147483648, %v104_v20  ;;  %vm110_vm2 = vcmp.eq.f32.partialorder %v104_v20, 0.0 }
 0x152   :  { %v103_v21 = vpop.xlane.xlu1 %102 }
 0x153   :  { %v105_v22 = vmul.f32 0.007874016, %v103_v21 }
 0x155   :  { %377 = vrsqrt.f32 %v105_v22  ;;  %vm115_vm3 = vcmp.eq.f32.partialorder %v105_v22, inf  ;;  %v118_v31 = vand.u32 2147483648, %v105_v22  ;;  %vm117_vm4 = vcmp.eq.f32.partialorder %v105_v22, 0.0 }
 0x15e   :  { %v376_v23 = vpop.eup %375 }
 0x15f   :  { %v107_v24 = vmul.f32 %v376_v23, %v104_v20 }
 0x161   :  { %v109_v26 = vsel %vm108_vm1, %v104_v20, %v107_v24 }
 0x162   :  { %v378_v27 = vpop.eup %377  ;;  %v112_v28 = vsel %vm110_vm2, %v111_v25, %v109_v26 }
 0x163   :  { %v120_v29 = vadd.f32 1e-06, %v112_v28  ;;  %v114_v30 = vmul.f32 %v378_v27, %v105_v22 }
 0x165   :  { %379 = vrcp.f32 %v120_v29  ;;  %v116_v32 = vsel %vm115_vm3, %v105_v22, %v114_v30 }
 0x166   :  { %v119_v33 = vsel %vm117_vm4, %v118_v31, %v116_v32 }
 0x167   :  { %v121_v34 = vadd.f32 1e-06, %v119_v33 }
 0x169   :  { %381 = vrcp.f32 %v121_v34 }
 0x172   :  { %v380_v36 = vpop.eup %379 }
 0x173   :  { %v135_v39 = vmul.f32 %v380_v36, %v133_v37 }
 0x175   :  { %v144_v43 = vadd.f32 %v306_v41, %v135_v39 }
 0x176   :  { %v382_v40 = vpop.eup %381 }
 0x177   :  { %v136_v42 = vmul.f32 %v382_v40, %v134_v38 }
 0x179   :  { %v145_v44 = vadd.f32 %v306_v41, %v136_v42 }
 0x17b   :  { %v324_v45 = vpack.c.bf16 %v145_v44, %v144_v43 }
 0x17d   :  { %325 = vst [vmem:[#allocation2] sm:$0xff] %v324_v45  }
 0x184   :  { %v374_v46 = vld [vmem:[#allocation2] sm:$0xff]  }
 0x185   :  { %352 = vmatmul.mubr.bf16.vlgmr.msra.gmra.mxu0 %v374_v46 }
 0x245   :  { %v269_v48 = vpop.f32.mrf.mxu0 }
 0x246   :  { %v270_v50 = vadd.f32 %v309_v47, %v269_v48 }
 0x247   :  { %v353_v52 = vpop.f32.mrf.mxu0 }
 0x248   :  { %v280_v53 = vmul.f32 %v278_v49, %v270_v50 }
 0x249   :  { %v272_v54 = vpop.f32.mrf.mxu0 }
 0x24a   :  { %v282_v56 = vadd.f32 %v280_v53, %v276_v51  ;;  %v273_v57 = vadd.f32 %v309_v47, %v272_v54 }
 0x24b   :  { %v354_v59 = vpop.f32.mrf.mxu0 }
 0x24c   :  { %284 = vst [vmem:[#allocation11] sm:$0xff] %v282_v56  ;;  %v281_v60 = vmul.f32 %v279_v55, %v273_v57 }
 0x24e   :  { %v283_v61 = vadd.f32 %v281_v60, %v277_v58 }
 0x250   :  { %285 = vst [vmem:[#allocation11 + $0x8] sm:$0xff] %v283_v61 }
 0x251   :  { %474 = shalt.err (!%p471_p10)
}
 0x252   :  { %297 = dma.vmem_to_hbm [thread:$0]  %s292_s2, 256, %s585_s7, [#allocation5], %s495_s11, %s495_s11, %s496_s12  }
 0x253   :  { %489 = dma.done.wait [#allocation5], 256  }
 0x254   :  { %490 = vsyncadd [#allocation5], 4294967040 }
 0x255   :  { %301 = vsyncpa [#allocation4], 1 }
 0x256   :  { %302 = vsyncpa [#allocation7], 1 }
 0x257   :  { %303 = vsyncpa [#allocation10], 1 }
 0x258   :  { %304 = vsyncpa [#allocation5], 1 }

</bundles_post_ra>
